<compile_context>
chip_gen: v5e
topology: v5e:2x2
jax: 0.10.0
libtpu: 0.0.40
codegen_flags: <defaults>
</compile_context>

<pallas_src>
import jax
import jax.numpy as jnp
from jax import lax
from jax.experimental import pallas as pl
from jax.experimental.pallas import tpu as pltpu

# ----------------------------- model config (small, synthetic) --------------------
T = 8                                     # sequence length
HIDDEN = 32                               # hidden size
NUM_HEADS = 4
NUM_KV_HEADS = 2
HEAD_DIM = HIDDEN // NUM_HEADS            # 8
Q_SIZE = NUM_HEADS * HEAD_DIM             # 32
KV_SIZE = NUM_KV_HEADS * HEAD_DIM         # 16
GROUP = NUM_HEADS // NUM_KV_HEADS         # 2  (GQA group size)
QK_EXP = 2 * Q_SIZE                       # 64  q | k (k expanded per query head)
QKV_EXP = 3 * Q_SIZE                      # 96  q | k_exp | v_exp
NHT = NUM_HEADS * T                       # 32  score lane width
SCALE = HEAD_DIM ** -0.5
ROPE_THETA = 10000.0
LN_EPS = 1e-5
NEG_INF = -1e30
OUT_PAD = 128                             # lane-dense padded projection width

assert NUM_HEADS % NUM_KV_HEADS == 0
assert QKV_EXP <= OUT_PAD and 2 * QK_EXP <= OUT_PAD


# ----------------------------- Pallas kernel --------------------------------------
def cohere_attn_kernel(
    x_ref,       # [T, HIDDEN]        bf16
    w_ref,       # [2*HIDDEN, 128]    bf16  rows 0:32 = padded expanded qkv W, 32:64 = padded o_proj W
    bconst_ref,  # [96, 128]          bf16  rows 0:64 = [avg | pair-swap], rows 64:96 = GQA block mask
    ftab_ref,    # [3*T, 64]          f32   rows 0:8 cos', 8:16 sin', 16:24 causal bias (lanes 0:32)
    out_ref,     # [T, 128]           bf16  padded lane-dense output
):
    f32, bf16 = jnp.float32, jnp.bfloat16

    # constants / weights (all slices of the merged VMEM blocks are tile aligned)
    w_qkv = w_ref[0:HIDDEN, :]                          # [32, 128] (cols 96:128 are zero)
    w_o = w_ref[HIDDEN:2 * HIDDEN, :]                   # [32, 128]
    lnswap = bconst_ref[0:QK_EXP, :]                    # [64, 128]  [avg | pair-swap]
    kvmask = bconst_ref[QK_EXP:QK_EXP + NHT, 0:Q_SIZE]  # [32, 32]   block-diag 0/1 head mask
    cos_t = ftab_ref[0:T, :]                            # [8, 64]    LN weight * SCALE folded in
    sin_t = ftab_ref[T:2 * T, :]                        # [8, 64]    signed, swap(w) * SCALE folded in
    causal = ftab_ref[2 * T:3 * T, 0:NHT]               # [8, 32]    additive causal bias (0 / -1e30)

    # 1) merged QKV projection: one MXU push (bf16 operands, f32 accumulate)
    qkv = jnp.dot(x_ref[...], w_qkv, preferred_element_type=f32)      # [T, 128]
    qk = qkv[:, :QK_EXP]                                              # [T, 64]
    v = qkv[:, QK_EXP:QK_EXP + Q_SIZE]                                # [T, 32]

    # 2) LN stats (mean, E[x^2]) and the rope pair-swap in ONE matmul on stacked data
    stk = jnp.concatenate([qk, qk * qk], axis=0).astype(bf16)         # [2T, 64]
    sres = jnp.dot(stk, lnswap, preferred_element_type=f32)           # [2T, 128]
    mean = sres[0:T, 0:QK_EXP]
    qk_sw = sres[0:T, QK_EXP:2 * QK_EXP]    # swap_adjacent(qk); swap(mean)=mean, swap(rstd)=rstd per head
    ex2 = sres[T:2 * T, 0:QK_EXP]
    # var = E[x^2] - mean^2 (clamped; fine for LN on O(1) activations in f32 accumulation)
    rstd = lax.rsqrt(jnp.maximum(ex2 - mean * mean, 0.0) + LN_EPS)
    # GPT-J interleaved rope; LN weight and attention SCALE are folded into cos_t/sin_t
    qk_r = (qk - mean) * rstd * cos_t + (qk_sw - mean) * rstd * sin_t  # [T, 64]
    q = qk_r[:, :Q_SIZE].astype(bf16)                                  # [T, 32] (already * SCALE)
    k = qk_r[:, Q_SIZE:QK_EXP]                                         # [T, 32] f32

    # 3) scores for all heads in one block-diagonal NT matmul
    k_big = (jnp.concatenate([k] * NUM_HEADS, axis=0) * kvmask).astype(bf16)   # [NHT, 32]
    s = lax.dot_general(q, k_big, (((1,), (1,)), ((), ())),
                        preferred_element_type=f32) + causal           # [T, NHT]
    # Single global row max: exact (a per-row constant cancels inside each head's
    # softmax). Post-QK-norm scores are bounded, and the denominator clamp below
    # prevents 0 * inf -> NaN in the exp-underflow corner case.
    m = jnp.max(s, axis=-1, keepdims=True)
    p = jnp.exp(s - m).astype(bf16)                                    # [T, NHT]

    # 4) PV and per-head softmax denominators in ONE matmul ([V_big | kvmask] RHS);
    #    (p @ V) / denom == (p / denom) @ V exactly (denom constant per head block).
    v_big = jnp.concatenate([v] * NUM_HEADS, axis=0) * kvmask          # [NHT, 32] f32
    pv_rhs = jnp.concatenate([v_big, kvmask.astype(f32)], axis=-1).astype(bf16)  # [NHT, 64]
    pv = jnp.dot(p, pv_rhs, preferred_element_type=f32)                # [T, 64]
    denom = jnp.maximum(pv[:, Q_SIZE:QK_EXP], 1e-30)
    attn = (pv[:, :Q_SIZE] * pl.reciprocal(denom, approx=True)).astype(bf16)     # [T, 32]

    # 5) o_proj: lane-dense padded output -> single unmasked (8,128) store, bf16 writeback
    out_ref[...] = jnp.dot(attn, w_o, preferred_element_type=f32).astype(out_ref.dtype)


# ----------------------------- wrapper ---------------------------------------------
def cohere_attention_pallas(x, wqkv, wo, q_norm_w, k_norm_w, positions):
    """Builds the fused constant tables (glue) and calls the kernel.

    Returns the padded lane-dense [T, OUT_PAD] bf16 output (downstream consumers can
    keep the padded layout; slice [:, :HIDDEN] only if a narrow result is required).
    """
    f32, bf16 = jnp.float32, jnp.bfloat16

    # ---- GQA repeat folded into the projection weight (K/V expanded per query head)
    Wq = wqkv[:, :Q_SIZE]
    Wk = wqkv[:, Q_SIZE:Q_SIZE + KV_SIZE]
    Wv = wqkv[:, Q_SIZE + KV_SIZE:]
    Wk_exp = jnp.repeat(Wk.reshape(HIDDEN, NUM_KV_HEADS, HEAD_DIM), GROUP,
                        axis=1).reshape(HIDDEN, Q_SIZE)
    Wv_exp = jnp.repeat(Wv.reshape(HIDDEN, NUM_KV_HEADS, HEAD_DIM), GROUP,
                        axis=1).reshape(HIDDEN, Q_SIZE)
    wqkv_exp = jnp.concatenate([Wq, Wk_exp, Wv_exp], axis=1)                 # [32, 96]
    wqkv_pad = jnp.zeros((HIDDEN, OUT_PAD), f32).at[:, :QKV_EXP].set(wqkv_exp)
    wo_pad = jnp.zeros((Q_SIZE, OUT_PAD), f32).at[:, :HIDDEN].set(wo)
    w_all = jnp.concatenate([wqkv_pad, wo_pad], axis=0).astype(bf16)         # [64, 128]

    # ---- LN weight / SCALE / rope tables folded together ---------------------------
    w_lane = jnp.concatenate([
        q_norm_w.reshape(-1),
        jnp.repeat(k_norm_w, GROUP, axis=0).reshape(-1),                      # k weights per query head
    ]).astype(f32)                                                            # [QK_EXP]
    w_swap = w_lane.reshape(-1, 2)[:, ::-1].reshape(-1)                       # adjacent-pair swap of w
    scale_lane = jnp.where(jnp.arange(QK_EXP) < Q_SIZE, SCALE, 1.0).astype(f32)

    inv_freq = 1.0 / (ROPE_THETA ** (jnp.arange(0, HEAD_DIM, 2, dtype=f32) / HEAD_DIM))
    freqs = positions.astype(f32)[:, None] * inv_freq[None, :]                # [T, HD/2]
    cos_rep = jnp.repeat(jnp.cos(freqs), 2, axis=-1)                          # [T, HD]
    sin_rep = jnp.repeat(jnp.sin(freqs), 2, axis=-1)                          # [T, HD]
    sign = jnp.where(jnp.arange(HEAD_DIM) % 2 == 0, -1.0, 1.0).astype(f32)
    n_blk = QK_EXP // HEAD_DIM                                                # 8 head blocks (q + k_exp)
    cos_tab = jnp.tile(cos_rep, (1, n_blk)) * (w_lane * scale_lane)[None, :]  # [T, 64]
    sin_tab = (jnp.tile(sin_rep * sign[None, :], (1, n_blk))
               * (w_swap * scale_lane)[None, :])                              # [T, 64]

    # ---- causal additive bias tiled per head ---------------------------------------
    tri = jnp.where(jnp.tril(jnp.ones((T, T), dtype=bool)), 0.0, NEG_INF).astype(f32)
    causal_pad = jnp.zeros((T, QK_EXP), f32).at[:, :NHT].set(jnp.tile(tri, (1, NUM_HEADS)))

    ftab = jnp.concatenate([cos_tab, sin_tab, causal_pad], axis=0)            # [24, 64] f32

    # ---- constant 0/1 matrices (bf16-exact) ----------------------------------------
    i64 = jnp.arange(QK_EXP)
    avg = ((i64[:, None] // HEAD_DIM) == (i64[None, :] // HEAD_DIM)).astype(f32) / HEAD_DIM
    swap = ((i64[:, None] ^ 1) == i64[None, :]).astype(f32)
    lnswap = jnp.concatenate([avg, swap], axis=1)                             # [64, 128]
    r32 = jnp.arange(NHT)
    c32 = jnp.arange(Q_SIZE)
    kvmask = ((r32[:, None] // T) == (c32[None, :] // HEAD_DIM)).astype(f32)  # [32, 32]
    kvmask_pad = jnp.zeros((NHT, 2 * QK_EXP), f32).at[:, :Q_SIZE].set(kvmask)
    bconst = jnp.concatenate([lnswap, kvmask_pad], axis=0).astype(bf16)       # [96, 128]

    args = (x.astype(bf16), w_all, bconst, ftab)
    in_specs = [pl.BlockSpec(a.shape, lambda i: (0, 0)) for a in args]

    out = pl.pallas_call(
        cohere_attn_kernel,
        grid=(1,),
        in_specs=in_specs,
        out_specs=pl.BlockSpec((T, OUT_PAD), lambda i: (0, 0)),
        out_shape=jax.ShapeDtypeStruct((T, OUT_PAD), bf16),
        compiler_params=pltpu.CompilerParams(
            # Single-point grid at this toy size; for real sequence lengths make the
            # query-tile axis "parallel" (v7x has 2 TensorCores) and the kv axis
            # "arbitrary".
            dimension_semantics=("arbitrary",)),
    )(*args)
    return out


# ----------------------------- pure-JAX reference ----------------------------------
def cohere_attention_ref(x, wqkv, wo, q_norm_w, k_norm_w, positions):
    f32 = jnp.float32
    qkv = x @ wqkv
    q, k, v = (qkv[:, :Q_SIZE], qkv[:, Q_SIZE:Q_SIZE + KV_SIZE],
               qkv[:, Q_SIZE + KV_SIZE:])

    def ln(t, w, nh):
        th = t.reshape(T, nh, HEAD_DIM).astype(f32)
        mean = th.mean(-1, keepdims=True)
        var = ((th - mean) ** 2).mean(-1, keepdims=True)
        th = (th - mean) * lax.rsqrt(var + LN_EPS) * w[None]
        return th

    qh = ln(q, q_norm_w, NUM_HEADS)                      # [T, NH, HD]
    kh = ln(k, k_norm_w, NUM_KV_HEADS)                   # [T, NKV, HD]
    vh = v.reshape(T, NUM_KV_HEADS, HEAD_DIM)

    inv_freq = 1.0 / (ROPE_THETA ** (jnp.arange(0, HEAD_DIM, 2, dtype=f32) / HEAD_DIM))
    freqs = positions.astype(f32)[:, None] * inv_freq[None, :]
    cos, sin = jnp.cos(freqs), jnp.sin(freqs)            # [T, HD/2]

    def rope(t):                                          # GPT-J interleaved
        x1, x2 = t[..., 0::2], t[..., 1::2]
        o1 = x1 * cos[:, None, :] - x2 * sin[:, None, :]
        o2 = x2 * cos[:, None, :] + x1 * sin[:, None, :]
        return jnp.stack([o1, o2], axis=-1).reshape(t.shape)

    qh, kh = rope(qh), rope(kh)

    kh = jnp.repeat(kh, GROUP, axis=1)                    # [T, NH, HD]
    vh = jnp.repeat(vh, GROUP, axis=1)
    s = jnp.einsum("qhd,khd->hqk", qh, kh) * SCALE
    causal = jnp.tril(jnp.ones((T, T), dtype=bool))
    s = jnp.where(causal[None], s, NEG_INF)
    p = jax.nn.softmax(s, axis=-1)
    o = jnp.einsum("hqk,khd->qhd", p, vh).reshape(T, Q_SIZE)
    return o @ wo


# ----------------------------- main --------------------------------------------------
if __name__ == "__main__":
    key = jax.random.PRNGKey(0)
    k1, k2, k3, k4, k5 = jax.random.split(key, 5)

    x = jax.random.normal(k1, (T, HIDDEN), dtype=jnp.float32)
    wqkv = jax.random.normal(k2, (HIDDEN, Q_SIZE + 2 * KV_SIZE), dtype=jnp.float32) * 0.05
    wo = jax.random.normal(k3, (Q_SIZE, HIDDEN), dtype=jnp.float32) * 0.05
    q_norm_w = 1.0 + 0.1 * jax.random.normal(k4, (NUM_HEADS, HEAD_DIM), dtype=jnp.float32)
    k_norm_w = 1.0 + 0.1 * jax.random.normal(k5, (NUM_KV_HEADS, HEAD_DIM), dtype=jnp.float32)
    positions = jnp.arange(T, dtype=jnp.int32)

    out_pad = cohere_attention_pallas(x, wqkv, wo, q_norm_w, k_norm_w, positions)
    out_pad = jax.block_until_ready(out_pad)
    out = out_pad[:, :HIDDEN].astype(jnp.float32)        # slice only for the reference check

    ref = cohere_attention_ref(x, wqkv, wo, q_norm_w, k_norm_w, positions)
    max_err = float(jnp.max(jnp.abs(out - ref)))
    # bf16 MXU operands (projections / scores / PV) and bf16 output dominate the error
    # budget vs the pure-f32 reference; elementwise LN / rope / softmax stays f32.
    assert max_err < 2e-2, f"mismatch vs reference: max abs err {max_err}"

    print("KERNEL_OK")
</pallas_src>

<mosaic_0001>
module attributes {stable_mosaic.version = 11 : i64} {
  func.func @cohere_attn_kernel(%arg0: i32, %arg1: memref<8x32xbf16, #tpu.memory_space<vmem>>, %arg2: memref<64x128xbf16, #tpu.memory_space<vmem>>, %arg3: memref<96x128xbf16, #tpu.memory_space<vmem>>, %arg4: memref<24x64xf32, #tpu.memory_space<vmem>>, %arg5: memref<8x128xbf16, #tpu.memory_space<vmem>>) attributes {dimension_semantics = [#tpu.dimension_semantics<arbitrary>], iteration_bounds = array<i64: 1>, scalar_prefetch = 0 : i64, scratch_operands = 0 : i64, tpu.core_type = #tpu.core_type<tc>, window_params = [{pipeline_mode = #tpu.pipeline_mode<synchronous>, transform_indices = @transform_0, window_bounds = array<i64: 8, 32>}, {pipeline_mode = #tpu.pipeline_mode<synchronous>, transform_indices = @transform_1, window_bounds = array<i64: 64, 128>}, {pipeline_mode = #tpu.pipeline_mode<synchronous>, transform_indices = @transform_2, window_bounds = array<i64: 96, 128>}, {pipeline_mode = #tpu.pipeline_mode<synchronous>, transform_indices = @transform_3, window_bounds = array<i64: 24, 64>}, {pipeline_mode = #tpu.pipeline_mode<synchronous>, transform_indices = @transform_4, window_bounds = array<i64: 8, 128>}]} {
    %c0 = arith.constant 0 : index
    %c0_0 = arith.constant 0 : index
    %0 = vector.load %arg2[%c0, %c0_0] : memref<64x128xbf16, #tpu.memory_space<vmem>>, vector<32x128xbf16>
    %c32 = arith.constant 32 : index
    %c0_1 = arith.constant 0 : index
    %1 = vector.load %arg2[%c32, %c0_1] : memref<64x128xbf16, #tpu.memory_space<vmem>>, vector<32x128xbf16>
    %c0_2 = arith.constant 0 : index
    %c0_3 = arith.constant 0 : index
    %2 = vector.load %arg3[%c0_2, %c0_3] : memref<96x128xbf16, #tpu.memory_space<vmem>>, vector<64x128xbf16>
    %c64 = arith.constant 64 : index
    %c0_4 = arith.constant 0 : index
    %3 = vector.load %arg3[%c64, %c0_4] : memref<96x128xbf16, #tpu.memory_space<vmem>>, vector<32x32xbf16>
    %c0_5 = arith.constant 0 : index
    %c0_6 = arith.constant 0 : index
    %4 = vector.load %arg4[%c0_5, %c0_6] : memref<24x64xf32, #tpu.memory_space<vmem>>, vector<8x64xf32>
    %c8 = arith.constant 8 : index
    %c0_7 = arith.constant 0 : index
    %5 = vector.load %arg4[%c8, %c0_7] : memref<24x64xf32, #tpu.memory_space<vmem>>, vector<8x64xf32>
    %c16 = arith.constant 16 : index
    %c0_8 = arith.constant 0 : index
    %6 = vector.load %arg4[%c16, %c0_8] : memref<24x64xf32, #tpu.memory_space<vmem>>, vector<8x32xf32>
    %c0_9 = arith.constant 0 : index
    %c0_10 = arith.constant 0 : index
    %7 = vector.load %arg1[%c0_9, %c0_10] : memref<8x32xbf16, #tpu.memory_space<vmem>>, vector<8x32xbf16>
    %cst = arith.constant dense<0.000000e+00> : vector<8x128xf32>
    %8 = tpu.matmul %7, %0, %cst {dimension_numbers = #tpu.dot_dimension_numbers<[1], [0], [0], [1], [0, 0, 1, 1], [], []>} : vector<8x32xbf16>, vector<32x128xbf16>, vector<8x128xf32> -> vector<8x128xf32>
    %9 = vector.extract_strided_slice %8 {offsets = [0, 0], sizes = [8, 64], strides = [1, 1]} : vector<8x128xf32> to vector<8x64xf32>
    %10 = vector.extract_strided_slice %8 {offsets = [0, 64], sizes = [8, 32], strides = [1, 1]} : vector<8x128xf32> to vector<8x32xf32>
    %11 = arith.mulf %9, %9 : vector<8x64xf32>
    %12 = tpu.concatenate %9, %11 in 0 : vector<8x64xf32>, vector<8x64xf32> -> vector<16x64xf32>
    %13 = arith.truncf %12 : vector<16x64xf32> to vector<16x64xbf16>
    %cst_11 = arith.constant dense<0.000000e+00> : vector<16x128xf32>
    %14 = tpu.matmul %13, %2, %cst_11 {dimension_numbers = #tpu.dot_dimension_numbers<[1], [0], [0], [1], [0, 0, 1, 1], [], []>} : vector<16x64xbf16>, vector<64x128xbf16>, vector<16x128xf32> -> vector<16x128xf32>
    %15 = vector.extract_strided_slice %14 {offsets = [0, 0], sizes = [8, 64], strides = [1, 1]} : vector<16x128xf32> to vector<8x64xf32>
    %16 = vector.extract_strided_slice %14 {offsets = [0, 64], sizes = [8, 64], strides = [1, 1]} : vector<16x128xf32> to vector<8x64xf32>
    %17 = vector.extract_strided_slice %14 {offsets = [8, 0], sizes = [8, 64], strides = [1, 1]} : vector<16x128xf32> to vector<8x64xf32>
    %18 = arith.mulf %15, %15 : vector<8x64xf32>
    %19 = arith.subf %17, %18 : vector<8x64xf32>
    %cst_12 = arith.constant 0.000000e+00 : f32
    %20 = vector.broadcast %cst_12 : f32 to vector<8x64xf32>
    %21 = arith.maximumf %19, %20 : vector<8x64xf32>
    %cst_13 = arith.constant 9.99999974E-6 : f32
    %22 = vector.broadcast %cst_13 : f32 to vector<8x64xf32>
    %23 = arith.addf %21, %22 : vector<8x64xf32>
    %24 = math.rsqrt %23 : vector<8x64xf32>
    %25 = arith.subf %9, %15 : vector<8x64xf32>
    %26 = arith.mulf %25, %24 : vector<8x64xf32>
    %27 = arith.mulf %26, %4 : vector<8x64xf32>
    %28 = arith.subf %16, %15 : vector<8x64xf32>
    %29 = arith.mulf %28, %24 : vector<8x64xf32>
    %30 = arith.mulf %29, %5 : vector<8x64xf32>
    %31 = arith.addf %27, %30 : vector<8x64xf32>
    %32 = vector.extract_strided_slice %31 {offsets = [0, 0], sizes = [8, 32], strides = [1, 1]} : vector<8x64xf32> to vector<8x32xf32>
    %33 = arith.truncf %32 : vector<8x32xf32> to vector<8x32xbf16>
    %34 = vector.extract_strided_slice %31 {offsets = [0, 32], sizes = [8, 32], strides = [1, 1]} : vector<8x64xf32> to vector<8x32xf32>
    %35 = tpu.concatenate %34, %34, %34, %34 in 0 : vector<8x32xf32>, vector<8x32xf32>, vector<8x32xf32>, vector<8x32xf32> -> vector<32x32xf32>
    %36 = arith.extf %3 : vector<32x32xbf16> to vector<32x32xf32>
    %37 = arith.mulf %35, %36 : vector<32x32xf32>
    %38 = arith.truncf %37 : vector<32x32xf32> to vector<32x32xbf16>
    %cst_14 = arith.constant dense<0.000000e+00> : vector<8x32xf32>
    %39 = tpu.matmul %33, %38, %cst_14 {dimension_numbers = #tpu.dot_dimension_numbers<[1], [1], [0], [0], [0, 0, 1, 0], [], []>} : vector<8x32xbf16>, vector<32x32xbf16>, vector<8x32xf32> -> vector<8x32xf32>
    %40 = arith.addf %39, %6 : vector<8x32xf32>
    %cst_15 = arith.constant dense<0xFF800000> : vector<8xf32>
    %41 = vector.multi_reduction <maximumf>, %40, %cst_15 [1] : vector<8x32xf32> to vector<8xf32>
    %42 = vector.shape_cast %41 : vector<8xf32> to vector<8x1xf32>
    %43 = vector.broadcast %42 : vector<8x1xf32> to vector<8x32xf32>
    %44 = arith.subf %40, %43 : vector<8x32xf32>
    %45 = math.exp %44 : vector<8x32xf32>
    %46 = arith.truncf %45 : vector<8x32xf32> to vector<8x32xbf16>
    %47 = tpu.concatenate %10, %10, %10, %10 in 0 : vector<8x32xf32>, vector<8x32xf32>, vector<8x32xf32>, vector<8x32xf32> -> vector<32x32xf32>
    %48 = arith.extf %3 : vector<32x32xbf16> to vector<32x32xf32>
    %49 = arith.mulf %47, %48 : vector<32x32xf32>
    %50 = arith.extf %3 : vector<32x32xbf16> to vector<32x32xf32>
    %51 = tpu.concatenate %49, %50 in 1 : vector<32x32xf32>, vector<32x32xf32> -> vector<32x64xf32>
    %52 = arith.truncf %51 : vector<32x64xf32> to vector<32x64xbf16>
    %cst_16 = arith.constant dense<0.000000e+00> : vector<8x64xf32>
    %53 = tpu.matmul %46, %52, %cst_16 {dimension_numbers = #tpu.dot_dimension_numbers<[1], [0], [0], [1], [0, 0, 1, 1], [], []>} : vector<8x32xbf16>, vector<32x64xbf16>, vector<8x64xf32> -> vector<8x64xf32>
    %54 = vector.extract_strided_slice %53 {offsets = [0, 32], sizes = [8, 32], strides = [1, 1]} : vector<8x64xf32> to vector<8x32xf32>
    %cst_17 = arith.constant 1.000000e-30 : f32
    %55 = vector.broadcast %cst_17 : f32 to vector<8x32xf32>
    %56 = arith.maximumf %54, %55 : vector<8x32xf32>
    %57 = vector.extract_strided_slice %53 {offsets = [0, 0], sizes = [8, 32], strides = [1, 1]} : vector<8x64xf32> to vector<8x32xf32>
    %58 = tpu.reciprocal %56 {approx = true} : vector<8x32xf32> -> vector<8x32xf32>
    %59 = arith.mulf %57, %58 : vector<8x32xf32>
    %60 = arith.truncf %59 : vector<8x32xf32> to vector<8x32xbf16>
    %cst_18 = arith.constant dense<0.000000e+00> : vector<8x128xf32>
    %61 = tpu.matmul %60, %1, %cst_18 {dimension_numbers = #tpu.dot_dimension_numbers<[1], [0], [0], [1], [0, 0, 1, 1], [], []>} : vector<8x32xbf16>, vector<32x128xbf16>, vector<8x128xf32> -> vector<8x128xf32>
    %62 = arith.truncf %61 : vector<8x128xf32> to vector<8x128xbf16>
    %c0_19 = arith.constant 0 : index
    %c0_20 = arith.constant 0 : index
    %63 = vector.load %arg5[%c0_19, %c0_20] : memref<8x128xbf16, #tpu.memory_space<vmem>>, vector<8x128xbf16>
    tpu.vector_store %arg5[%c0_19, %c0_20], %62 {strides = array<i32>} : memref<8x128xbf16, #tpu.memory_space<vmem>>, vector<8x128xbf16>,
    return
  }
  func.func @transform_0(%arg0: i32) -> (i32, i32) {
    %c0_i32 = arith.constant 0 : i32
    %c0_i32_0 = arith.constant 0 : i32
    %c0_i32_1 = arith.constant 0 : i32
    return %c0_i32, %c0_i32_0 : i32, i32
  }
  func.func @transform_1(%arg0: i32) -> (i32, i32) {
    %c0_i32 = arith.constant 0 : i32
    %c0_i32_0 = arith.constant 0 : i32
    %c0_i32_1 = arith.constant 0 : i32
    return %c0_i32, %c0_i32_0 : i32, i32
  }
  func.func @transform_2(%arg0: i32) -> (i32, i32) {
    %c0_i32 = arith.constant 0 : i32
    %c0_i32_0 = arith.constant 0 : i32
    %c0_i32_1 = arith.constant 0 : i32
    return %c0_i32, %c0_i32_0 : i32, i32
  }
  func.func @transform_3(%arg0: i32) -> (i32, i32) {
    %c0_i32 = arith.constant 0 : i32
    %c0_i32_0 = arith.constant 0 : i32
    %c0_i32_1 = arith.constant 0 : i32
    return %c0_i32, %c0_i32_0 : i32, i32
  }
  func.func @transform_4(%arg0: i32) -> (i32, i32) {
    %c0_i32 = arith.constant 0 : i32
    %c0_i32_0 = arith.constant 0 : i32
    %c0_i32_1 = arith.constant 0 : i32
    return %c0_i32, %c0_i32_0 : i32, i32
  }
}

</mosaic_0001>

<bundles_post_ra>
// kernel: tpu_custom_call.1
= control target key start
LH: loop header
LB: loop body
LE: loop exit
PB: predicated region body
PF: predicated region fallthrough
CT: control target
= control target key end

     0   :  { %9 = vsyncpa [#allocation3], 0  ;;  %s712_s0 = inlined_call_operand.hbm [shape: bf16[8,32], index: 0, kind: input, shape index: {}]   ;;  %s713_s1 = inlined_call_operand.hbm [shape: bf16[64,128], index: 1, kind: input, shape index: {}]   ;;  %s714_s2 = inlined_call_operand.hbm [shape: bf16[96,128], index: 2, kind: input, shape index: {}]   ;;  %s715_s3 = inlined_call_operand.hbm [shape: f32[24,64], index: 3, kind: input, shape index: {}]   ;;  %s716_s4 = inlined_call_operand.hbm [shape: bf16[8,128], index: 4, kind: output, shape index: {}]  }
   0x1   :  { %10 = vsyncpa [#allocation6], 0 }
   0x2   :  { %11 = vsyncpa [#allocation9], 0  ;;  %s28_s17 = sshll.u32 %s713_s1, 4  ;;  %s29_s17 = int_to_ptr.hbm [resolvable:$true] %s28_s17 }
   0x3   :  { %12 = vsyncpa [#allocation4], 0  ;;  %s617_s18 = smov [#allocation5]   ;;  %s18_s22 = sshll.u32 %s712_s0, 4  ;;  %s19_s22 = int_to_ptr.hbm [resolvable:$true] %s18_s22 }
   0x4   :  { %s30_s19 = sshll.u32 %s617_s18, 4  ;;  %s618_s23 = smov 64   ;;  %s31_s19 = int_to_ptr.vmem [resolvable:$true] %s30_s19 }
   0x5   :  { %s619_s24 = smov 4   ;;  %s620_s25 = smov [#allocation2]  }
   0x6   :  { %36 = dma.hbm_to_vmem [thread:$0]  %s29_s17, 512, %s31_s19, [#allocation6], %s618_s23, %s618_s23, %s619_s24  }
   0x7   :  { %s20_s26 = sshll.u32 %s620_s25, 4  ;;  %s41_s1 = sshll.u32 %s714_s2, 4  ;;  %s21_s26 = int_to_ptr.vmem [resolvable:$true] %s20_s26  ;;  %s42_s1 = int_to_ptr.hbm [resolvable:$true] %s41_s1 }
   0x8   :  { %23 = dma.hbm_to_vmem [thread:$0]  %s19_s22, 64, %s21_s26, [#allocation3]  }
   0x9   :  { %s54_s5 = sshll.u32 %s715_s3, 4  ;;  %s621_s0 = smov [#allocation7]   ;;  %s55_s5 = int_to_ptr.hbm [resolvable:$true] %s54_s5 }
   0xa   :  { %s43_s6 = sshll.u32 %s621_s0, 4  ;;  %s622_s7 = smov [#allocation8]   ;;  %s44_s6 = int_to_ptr.vmem [resolvable:$true] %s43_s6 }
   0xb   :  { %49 = dma.hbm_to_vmem [thread:$0]  %s42_s1, 768, %s44_s6, [#allocation6], %s618_s23, %s618_s23, %s619_s24  }
   0xc   :  { %s56_s8 = sshll.u32 %s622_s7, 4  ;;  %s623_s9 = smov 128   ;;  %s57_s8 = int_to_ptr.vmem [resolvable:$true] %s56_s8 }
   0xd   :  { %s624_s10 = smov 8  }
   0xe   :  { %62 = dma.hbm_to_vmem [thread:$0]  %s55_s5, 384, %s57_s8, [#allocation9], %s623_s9, %s623_s9, %s624_s10  }
   0xf   :  { %609 = dma.done.wait [#allocation3], 64  }
  0x10   :  { %610 = vsyncadd [#allocation3], 4294967232 }
  0x11   :  { %611 = dma.done.wait [#allocation6], 1280  }
  0x12   :  { %612 = vsyncadd [#allocation6], 4294966016 }
  0x13   :  { %613 = dma.done.wait [#allocation9], 384  }
  0x14   :  { %614 = vsyncadd [#allocation9], 4294966912  ;;  %v425_v0 = vld [vmem:[#allocation5 + $0x8] sm:$0xff]  ;;  %v424_v2 = vld [vmem:[#allocation5] sm:$0xff]  ;;  %vm116_vm0 = vcmask 261120   ;;  %s625_s2 = smov 32  }
  0x15   :  { %v441_v1 = vld [vmem:[#allocation7 + $0x28] sm:$0xff]   ;;  %126 = vmatpush.bf16.msra.mxu0 %v425_v0  ;;  %v440_v5 = vld [vmem:[#allocation7 + $0x20] sm:$0xff]   ;;  %v103_v7 = vld [vmem:[#allocation2] sm:$0xf]  ;;  %vm159_vm1 = vcmask 523264   ;;  %s626_s3 = smov 96  }
  0x16   :  { %v438_v3 = vunpack.c.l.bf16 %v441_v1  ;;  %v439_v4 = vunpack.c.h.bf16 %v441_v1  ;;  %v434_v8 = vunpack.c.l.bf16 %v440_v5  ;;  %v435_v9 = vunpack.c.h.bf16 %v440_v5  ;;  %v431_v11 = vld [vmem:[#allocation7 + $0x18] sm:$0xff]  ;;  %v430_v12 = vld [vmem:[#allocation7 + $0x10] sm:$0xff]  ;;  %v429_v13 = vld [vmem:[#allocation7 + $0x8] sm:$0xff]  ;;  %s627_s11 = smov [#allocation10]   ;;  %s375_s15 = sshll.u32 %s716_s4, 4  ;;  %s376_s15 = int_to_ptr.hbm [resolvable:$true] %s375_s15 }
  0x17   :  { %167 = vmatpush.bf16.msra.mxu1 %v431_v11  ;;  %v428_v14 = vld [vmem:[#allocation7] sm:$0xff]  ;;  %v101_v36 = vld [vmem:[#allocation8 + $0x8] sm:$0xff]  ;;  %v100_v57 = vld [vmem:[#allocation8] sm:$0xff]  ;;  %s373_s12 = sshll.u32 %s627_s11, 4  ;;  %s374_s12 = int_to_ptr.vmem [resolvable:$true] %s373_s12 }
  0x18   :  { %v453_v6 = vpack.i.bf16 %v439_v4, %v438_v3  ;;  %v670_v10 = vpack.i.bf16 %v435_v9, %v434_v8  ;;  %205 = vrot.lane.b32.xlu1 %v101_v36, %s618_s23 }
  0x19   :  { %127 = vmatpush.bf16.msra.mxu0 %v424_v2 }
  0x1a   :  { %454 = vrot.lane.b32.xlu2 %v453_v6, %s625_s2 }
  0x1b   :  { %168 = vmatpush.bf16.msra.mxu1 %v430_v12 }
  0x1c   :  { %395 = vmatmul.msk.bf16.vlgmr.msra.gmra.mxu0 %vm116_vm0, %v103_v7 }
  0x1f   :  { %169 = vmatpush.bf16.msra.mxu1 %v429_v13 }
  0x22   :  { %459 = vrot.lane.b32.xlu2 %v670_v10, %s625_s2 }
  0x23   :  { %170 = vmatpush.bf16.msra.mxu1 %v428_v14 }
  0x2a   :  { %464 = vrot.lane.b32.xlu2 %v453_v6, %s618_s23 }
  0x74   :  { %v455_v15 = vpop.permute.xlu2 %454 }
  0x75   :  { %v457_v27 = vunpack.i.h.bf16 %v455_v15  ;;  %v456_v28 = vunpack.i.l.bf16 %v455_v15 }
  0x7c   :  { %v674_v16 = vpop.permute.xlu2 %459 }
  0x7d   :  { %v462_v58 = vunpack.i.h.bf16 %v674_v16  ;;  %v461_v59 = vunpack.i.l.bf16 %v674_v16 }
  0x84   :  { %v465_v17 = vpop.permute.xlu2 %464 }
  0x85   :  { %v467_v18 = vunpack.i.h.bf16 %v465_v17  ;;  %v466_v19 = vunpack.i.l.bf16 %v465_v17 }
  0x8a   :  { %v206_v52 = vpop.permute.xlu1 %205 }
  0x99   :  { %v676_v20 = vpop.f32.mrf.mxu0 }
  0x9a   :  { %v290_v21 = vmul.f32 %v466_v19, %v676_v20  ;;  %v291_v22 = vmul.f32 %v467_v18, %v676_v20  ;;  %v133_v23 = vmul.f32 %v676_v20, %v676_v20 }
  0x9c   :  { %v473_v24 = vpack.i.bf16 %v291_v22, %v290_v21  ;;  %v134_v25 = vpack.c.bf16 %v133_v23, %v676_v20  ;;  %v102_v23 = vld [vmem:[#allocation8 + $0x10] sm:$0xff] }
  0x9e   :  { %474 = vrot.lane.b32.xlu2 %v473_v24, %s618_s23  ;;  %412 = vmatmul.msk.bf16.vlgmr.msra.gmra.mxu1 %vm159_vm1, %v134_v25 }
  0xa1   :  { %v131_v26 = vpop.f32.mrf.mxu0 }
  0xf8   :  { %v475_v29 = vpop.permute.xlu2 %474 }
  0xf9   :  { %v477_v30 = vunpack.i.h.bf16 %v475_v29  ;;  %v476_v31 = vunpack.i.l.bf16 %v475_v29 }
  0xfb   :  { %v310_v32 = vsel %vm116_vm0, %v476_v31, %v456_v28  ;;  %v311_v33 = vsel %vm116_vm0, %v477_v30, %v457_v27 }
  0xfc   :  { %v313_v34 = vpack.c.bf16 %v311_v33, %v310_v32  ;;  %v427_v32 = vld [vmem:[#allocation5 + $0x18] sm:$0xff]  ;;  %v426_v33 = vld [vmem:[#allocation5 + $0x10] sm:$0xff] }
  0xfd   :  { %359 = vmatpush.bf16.msrb.mxu0 %v427_v32 }
  0xfe   :  { %323 = vmatpush.bf16.msra.mxu3 %v313_v34 }
 0x101   :  { %360 = vmatpush.bf16.msrb.mxu0 %v426_v33 }
 0x11b   :  { %v172_v35 = vpop.f32.mrf.mxu1 }
 0x11c   :  { %195 = vrot.lane.b32.xlu0 %v172_v35, %s618_s23  ;;  %v177_v37 = vmul.f32 %v172_v35, %v172_v35  ;;  %v191_v55 = vsub.f32 %v676_v20, %v172_v35 }
 0x123   :  { %v174_v38 = vpop.f32.mrf.mxu1 }
 0x124   :  { %v178_v39 = vsub.f32 %v174_v38, %v177_v37 }
 0x126   :  { %v179_v40 = vmax.f32 %v178_v39, 0.0 }
 0x128   :  { %v180_v41 = vadd.f32 1e-05, %v179_v40 }
 0x12a   :  { %483 = vrsqrt.f32 %v180_v41  ;;  %vm187_vm3 = vweird.f32 %v180_v41 }
 0x130   :  { %v484_v42 = vpop.eup %483 }
 0x131   :  { %v182_v43 = vmul.f32 %v484_v42, %v180_v41  ;;  %vm188_vm2 = vweird.f32 %v484_v42 }
 0x132   :  { %vm189_vm4 = vmor %vm187_vm3, %vm188_vm2 }
 0x133   :  { %v183_v44 = vmul.f32 %v484_v42, %v182_v43 }
 0x135   :  { %v184_v45 = vmul.f32 0.5, %v183_v44 }
 0x137   :  { %v185_v46 = vsub.f32 1.5, %v184_v45 }
 0x139   :  { %v186_v47 = vmul.f32 %v484_v42, %v185_v46 }
 0x13b   :  { %v190_v48 = vsel %vm189_vm4, %v484_v42, %v186_v47 }
 0x13c   :  { %200 = vrot.lane.b32.xlu0 %v190_v48, %s618_s23  ;;  %v192_v56 = vmul.f32 %v191_v55, %v190_v48 }
 0x13e   :  { %v193_v60 = vmul.f32 %v192_v56, %v100_v57 }
 0x18e   :  { %v196_v49 = vpop.permute.xlu0 %195 }
 0x18f   :  { %v198_v50 = vsub.f32 %v172_v35, %v196_v49 }
 0x1ae   :  { %v201_v51 = vpop.permute.xlu0 %200 }
 0x1af   :  { %v203_v53 = vmul.f32 %v201_v51, %v198_v50 }
 0x1b1   :  { %v208_v54 = vmul.f32 %v206_v52, %v203_v53 }
 0x1b3   :  { %210 = vrot.lane.b32.xlu1 %v208_v54, %s618_s23 }
 0x225   :  { %v211_v61 = vpop.permute.xlu1 %210 }
 0x226   :  { %v213_v62 = vadd.f32 %v211_v61, %v193_v60 }
 0x228   :  { %v237_v63 = vmul.f32 %v456_v28, %v213_v62  ;;  %v238_v0 = vmul.f32 %v457_v27, %v213_v62  ;;  %v235_v1 = vmul.f32 %v461_v59, %v213_v62  ;;  %v236_v2 = vmul.f32 %v462_v58, %v213_v62 }
 0x229   :  { %v214_v16 = vpack.c.bf16 %v213_v62, %v213_v62 }
 0x22a   :  { %v240_v3 = vpack.c.bf16 %v238_v0, %v237_v63  ;;  %v239_v4 = vpack.c.bf16 %v236_v2, %v235_v1 }
 0x22c   :  { %245 = vrot.lane.b32.xlu0 %v240_v3, %s626_s3  ;;  %243 = vrot.lane.b32.xlu1 %v239_v4, %s626_s3 }
 0x234   :  { %469 = vrot.lane.b32.xlu0 %v670_v10, %s618_s23 }
 0x29e   :  { %v246_v5 = vpop.permute.xlu0 %245  ;;  %v244_v7 = vpop.permute.xlu1 %243 }
 0x29f   :  { %v254_v6 = vsel %vm116_vm0, %v246_v5, 0  ;;  %v251_v12 = vsel %vm116_vm0, %v244_v7, 0 }
 0x2a0   :  { %262 = vmatpush.bf16.xpose.msra.mxu2 %v254_v6 }
 0x2a6   :  { %v470_v8 = vpop.permute.xlu0 %469 }
 0x2a7   :  { %v472_v9 = vunpack.i.h.bf16 %v470_v8  ;;  %v471_v11 = vunpack.i.l.bf16 %v470_v8 }
 0x2a8   :  { %263 = vmatpush.bf16.xpose.msra.mxu2 %v251_v12 }
 0x2a9   :  { %v288_v13 = vmul.f32 %v471_v11, %v676_v20  ;;  %v289_v14 = vmul.f32 %v472_v9, %v676_v20 }
 0x2ab   :  { %v478_v15 = vpack.i.bf16 %v289_v14, %v288_v13 }
 0x2ad   :  { %479 = vrot.lane.b32.xlu0 %v478_v15, %s618_s23 }
 0x2af   :  { %413 = vmatmul.msk.bf16.vlgmr.msra.gmra.mxu2 %vm116_vm0, %v214_v16 }
 0x31f   :  { %v480_v10 = vpop.permute.xlu0 %479 }
 0x320   :  { %v482_v17 = vunpack.i.h.bf16 %v480_v10  ;;  %v481_v18 = vunpack.i.l.bf16 %v480_v10 }
 0x322   :  { %v308_v19 = vsel %vm116_vm0, %v481_v18, %v461_v59  ;;  %v309_v21 = vsel %vm116_vm0, %v482_v17, %v462_v58 }
 0x323   :  { %v312_v22 = vpack.c.bf16 %v309_v21, %v308_v19 }
 0x325   :  { %324 = vmatpush.bf16.msra.mxu3 %v312_v22 }
 0x332   :  { %v265_v24 = vpop.f32.mrf.mxu2 }
 0x333   :  { %v266_v25 = vadd.f32 %v265_v24, %v102_v23 }
 0x335   :  { %v269_v20 = vsel %vm116_vm0, %v266_v25, -inf }
 0x336   :  { %270 = vmax.xlane.f32.xlu1 %v269_v20 }
 0x33a   :  { %v267_v26 = vpop.f32.mrf.mxu2 }
 0x3a9   :  { %v271_v27 = vpop.xlane.xlu1 %270 }
 0x3aa   :  { %v272_v28 = vsub.f32 %v266_v25, %v271_v27 }
 0x3ac   :  { %v273_v29 = vmul.f32 1.442695, %v272_v28 }
 0x3ae   :  { %485 = vpow2.f32 %v273_v29 }
 0x3b4   :  { %v486_v30 = vpop.eup %485 }
 0x3b5   :  { %v275_v31 = vpack.c.bf16 %v486_v30, %v486_v30 }
 0x3b7   :  { %414 = vmatmul.msk.bf16.vlgmr.msra.gmra.mxu3 %vm116_vm0, %v275_v31 }
 0x43a   :  { %v326_v34 = vpop.f32.mrf.mxu3 }
 0x43b   :  { %v330_v35 = vmax.f32 %v326_v34, 1e-30 }
 0x43d   :  { %487 = vrcp.f32 %v330_v35 }
 0x442   :  { %v328_v36 = vpop.f32.mrf.mxu3 }
 0x443   :  { %v488_v37 = vpop.eup %487 }
 0x444   :  { %333 = vrot.lane.b32.xlu2 %v488_v37, %s626_s3 }
 0x49e   :  { %v334_v38 = vpop.permute.xlu2 %333 }
 0x49f   :  { %v336_v39 = vmul.f32 %v334_v38, %v326_v34 }
 0x4a1   :  { %v337_v40 = vpack.c.bf16 %v336_v39, %v336_v39 }
 0x4a3   :  { %423 = vmatmul.msk.bf16.vlgmr.msrb.gmra.mxu0 %vm116_vm0, %v337_v40 }
 0x520   :  { %v362_v41 = vpop.f32.mrf.mxu0 }
 0x521   :  { %v366_v42 = vpack.c.bf16 %v362_v41, %v362_v41 }
 0x523   :  { %367 = vst [vmem:[#allocation10] sm:$0xf] %v366_v42 }
 0x524   :  { %378 = dma.vmem_to_hbm [thread:$0]  %s374_s12, 64, %s376_s15, [#allocation4]  }
 0x528   :  { %v364_v43 = vpop.f32.mrf.mxu0 }
 0x529   :  { %615 = dma.done.wait [#allocation4], 64  }
 0x52a   :  { %616 = vsyncadd [#allocation4], 4294967232 }
 0x52b   :  { %383 = vsyncpa [#allocation3], 1 }
 0x52c   :  { %384 = vsyncpa [#allocation6], 1 }
 0x52d   :  { %385 = vsyncpa [#allocation9], 1 }
 0x52e   :  { %386 = vsyncpa [#allocation4], 1 }

</bundles_post_ra>
